<compile_context>
chip_gen: v7x
topology: tpu7x:2x2x1
jax: 0.10.0
libtpu: 0.0.40
codegen_flags: <defaults>
</compile_context>

<pallas_src>
import math

import jax
import jax.numpy as jnp
from jax import lax
from jax.experimental import pallas as pl
from jax.experimental.pallas import tpu as pltpu

# ---- problem sizes implied by the PyTorch script ----
B, S, D = 16, 16, 4          # query/value: (16, 16, 4)
BS = B * S                   # 256 flattened (batch, seq) rows
NUM_HEADS = 1                # see note in the header
INV_SCALE = math.sqrt(D / NUM_HEADS)
NEG_INF = -1e30

assert S & (S - 1) == 0, "S must be a power of two for the shift-based mask"
LOG2_S = S.bit_length() - 1

# 2-way split of the flattened rows. Each 128-column slab contains whole batch
# elements (128 = 8 * S), so attention never crosses a slab boundary and the
# relative (within-slab) batch-id mask is exact.
NSPLIT = 2
BLK = BS // NSPLIT
assert BLK % 128 == 0 and BLK % S == 0


def _attn_kernel(qv_ref, params_ref, oT_ref):
    # qv_ref:     (2D, BLK)   rows 0..D-1 = q^T slab, rows D..2D-1 = v^T slab
    # params_ref: (2D, D+1)   [ Wqk/s | (bqk+qk_b)/s ;  Wv | bv ]
    # oT_ref:     (D,  BLK)   output slab, feature-major (lane-dense stores)
    qv = qv_ref[...]
    qT = qv[:D, :]                                    # (D, BLK)
    vT = qv[D:, :]                                    # (D, BLK)

    prm = params_ref[...]
    wqk_s = prm[:D, :D]                               # (D, D), 1/inv_scale folded in
    bqk_s = prm[:D, D:]                               # (D, 1), (bqk+qk_b)/inv_scale
    wv = prm[D:, :D]                                  # (D, D)
    bv = prm[D:, D:]                                  # (D, 1)

    # Feature-major projections: lane-dense (D, BLK) results.
    q_projT = jnp.dot(wqk_s, qT, preferred_element_type=jnp.float32) + bqk_s
    v_projT = jnp.dot(wv, vT, preferred_element_type=jnp.float32) + bv

    # Scores in (key, query) layout so the final matmul needs no big transpose.
    # Only the tiny (D, BLK) v_projT goes through an XLU transpose here.
    v_proj = v_projT.T                                # (BLK, D)
    scores_kq = jnp.dot(v_proj, q_projT,
                        preferred_element_type=jnp.float32)   # (BLK_key, BLK_query)

    # Block-diagonal mask from two tiny batch-id iotas (broadcast in compare).
    kb = lax.broadcasted_iota(jnp.int32, (BLK, 1), 0) >> LOG2_S
    qb = lax.broadcasted_iota(jnp.int32, (1, BLK), 1) >> LOG2_S
    scores_kq = jnp.where(kb == qb, scores_kq, NEG_INF)

    # Softmax over keys (axis 0, sublanes). Every column has S valid entries,
    # so the max is never NEG_INF. Only `e` stays live as a (BLK, BLK) temp.
    m = jnp.max(scores_kq, axis=0, keepdims=True)     # (1, BLK)
    e = jnp.exp(scores_kq - m)                        # (BLK, BLK)
    denom = jnp.sum(e, axis=0, keepdims=True)         # (1, BLK)

    # Dropout = identity (inference).  See TODO(synk) in the header.

    # Unnormalized output: plain (D, K) x (K, BLK) matmul; normalize the tiny
    # (D, BLK) result instead of the (BLK, BLK) probabilities.
    out_unnorm = jnp.dot(v_projT, e, preferred_element_type=jnp.float32)
    oT_ref[...] = (out_unnorm *
                   pl.reciprocal(denom, approx=False)).astype(oT_ref.dtype)


@jax.jit
def model_forward(query, value, wqk, bqk, qk_b, wv, bv):
    """query/value: (B, S, D) float32. wqk/wv: (D, D); bqk/qk_b/bv: (D,)."""
    # Feature-major activations, packed into a single lane-dense operand.
    qT = query.reshape(BS, D).T                       # (D, BS)
    vT = value.reshape(BS, D).T                       # (D, BS)
    qv = jnp.concatenate([qT, vT], axis=0)            # (2D, BS)

    # Fold 1/inv_scale and the extra zero bias into the q-projection params;
    # pack all four tiny parameters into one operand -> one small DMA.
    wqk_s = wqk / INV_SCALE
    bqk_s = ((bqk + qk_b) / INV_SCALE).reshape(D, 1)
    params = jnp.concatenate(
        [jnp.concatenate([wqk_s, bqk_s], axis=1),
         jnp.concatenate([wv, bv.reshape(D, 1)], axis=1)],
        axis=0)                                       # (2D, D+1)

    outT = pl.pallas_call(
        _attn_kernel,
        out_shape=jax.ShapeDtypeStruct((D, BS), query.dtype),
        grid=(NSPLIT,),
        in_specs=[
            pl.BlockSpec((2 * D, BLK), lambda i: (0, i)),      # packed q^T / v^T slab
            pl.BlockSpec((2 * D, D + 1), lambda i: (0, 0)),    # packed parameters
        ],
        out_specs=pl.BlockSpec((D, BLK), lambda i: (0, i)),    # out^T slab (lane-dense)
        compiler_params=pltpu.CompilerParams(
            dimension_semantics=("parallel",)),
    )(qv, params)

    return outT.T.reshape(B, S, D)


def _reference(query, value, wqk, bqk, qk_b, wv, bv):
    hi = lax.Precision.HIGHEST
    q_proj = jnp.einsum('bsd,ed->bse', query, wqk, precision=hi) + bqk + qk_b
    v_proj = jnp.einsum('bsd,ed->bse', value, wv, precision=hi) + bv
    scores = jnp.einsum('bsd,btd->bst', q_proj, v_proj, precision=hi) / INV_SCALE
    p = jax.nn.softmax(scores, axis=-1)
    return jnp.einsum('bst,btd->bsd', p, v_proj, precision=hi)


if __name__ == "__main__":
    key = jax.random.PRNGKey(0)
    kq, kv, k1, k2, k3, k4 = jax.random.split(key, 6)

    query = jax.random.normal(kq, (B, S, D), dtype=jnp.float32)
    value = jax.random.normal(kv, (B, S, D), dtype=jnp.float32)

    # Deterministic parameter init (PyTorch Linear-style uniform bound 1/sqrt(fan_in)).
    bound = 1.0 / math.sqrt(D)
    wqk = jax.random.uniform(k1, (D, D), minval=-bound, maxval=bound, dtype=jnp.float32)
    bqk = jax.random.uniform(k2, (D,), minval=-bound, maxval=bound, dtype=jnp.float32)
    wv = jax.random.uniform(k3, (D, D), minval=-bound, maxval=bound, dtype=jnp.float32)
    bv = jax.random.uniform(k4, (D,), minval=-bound, maxval=bound, dtype=jnp.float32)
    qk_b = jnp.zeros((D,), dtype=jnp.float32)          # nn.Parameter(torch.zeros(d_model))

    out = jax.block_until_ready(model_forward(query, value, wqk, bqk, qk_b, wv, bv))

    ref = _reference(query, value, wqk, bqk, qk_b, wv, bv)
    assert out.shape == (B, S, D)
    # Tolerance leaves headroom for MXU f32 multi-pass emulation differences
    # while still catching any structural error (mask / bias / scale / layout).
    assert jnp.allclose(out, ref, atol=1e-3, rtol=1e-3), "mismatch vs reference"

    print("KERNEL_OK")
</pallas_src>

<mosaic_0001>
module attributes {stable_mosaic.version = 11 : i64} {
  func.func @_attn_kernel(%arg0: i32, %arg1: memref<8x128xf32, #tpu.memory_space<vmem>>, %arg2: memref<8x5xf32, #tpu.memory_space<vmem>>, %arg3: memref<4x128xf32, #tpu.memory_space<vmem>>) attributes {dimension_semantics = [#tpu.dimension_semantics<parallel>], iteration_bounds = array<i64: 2>, scalar_prefetch = 0 : i64, scratch_operands = 0 : i64, tpu.core_type = #tpu.core_type<tc>, window_params = [{transform_indices = @transform_0, window_bounds = array<i64: 8, 128>}, {pipeline_mode = #tpu.pipeline_mode<synchronous>, transform_indices = @transform_1, window_bounds = array<i64: 8, 5>}, {transform_indices = @transform_2, window_bounds = array<i64: 4, 128>}]} {
    %c0 = arith.constant 0 : index
    %c0_0 = arith.constant 0 : index
    %0 = vector.load %arg1[%c0, %c0_0] : memref<8x128xf32, #tpu.memory_space<vmem>>, vector<8x128xf32>
    %1 = vector.extract_strided_slice %0 {offsets = [0, 0], sizes = [4, 128], strides = [1, 1]} : vector<8x128xf32> to vector<4x128xf32>
    %2 = vector.extract_strided_slice %0 {offsets = [4, 0], sizes = [4, 128], strides = [1, 1]} : vector<8x128xf32> to vector<4x128xf32>
    %c0_1 = arith.constant 0 : index
    %c0_2 = arith.constant 0 : index
    %3 = vector.load %arg2[%c0_1, %c0_2] : memref<8x5xf32, #tpu.memory_space<vmem>>, vector<8x5xf32>
    %4 = vector.extract_strided_slice %3 {offsets = [0, 0], sizes = [4, 4], strides = [1, 1]} : vector<8x5xf32> to vector<4x4xf32>
    %5 = vector.extract_strided_slice %3 {offsets = [0, 4], sizes = [4, 1], strides = [1, 1]} : vector<8x5xf32> to vector<4x1xf32>
    %6 = vector.extract_strided_slice %3 {offsets = [4, 0], sizes = [4, 4], strides = [1, 1]} : vector<8x5xf32> to vector<4x4xf32>
    %7 = vector.extract_strided_slice %3 {offsets = [4, 4], sizes = [4, 1], strides = [1, 1]} : vector<8x5xf32> to vector<4x1xf32>
    %cst = arith.constant dense<0.000000e+00> : vector<4x128xf32>
    %8 = tpu.matmul %4, %1, %cst {dimension_numbers = #tpu.dot_dimension_numbers<[1], [0], [0], [1], [0, 0, 1, 1], [], []>} : vector<4x4xf32>, vector<4x128xf32>, vector<4x128xf32> -> vector<4x128xf32>
    %9 = vector.broadcast %5 : vector<4x1xf32> to vector<4x128xf32>
    %10 = arith.addf %8, %9 : vector<4x128xf32>
    %cst_3 = arith.constant dense<0.000000e+00> : vector<4x128xf32>
    %11 = tpu.matmul %6, %2, %cst_3 {dimension_numbers = #tpu.dot_dimension_numbers<[1], [0], [0], [1], [0, 0, 1, 1], [], []>} : vector<4x4xf32>, vector<4x128xf32>, vector<4x128xf32> -> vector<4x128xf32>
    %12 = vector.broadcast %7 : vector<4x1xf32> to vector<4x128xf32>
    %13 = arith.addf %11, %12 : vector<4x128xf32>
    %14 = tpu.transpose %13, [1, 0] : vector<4x128xf32> -> vector<128x4xf32>
    %cst_4 = arith.constant dense<0.000000e+00> : vector<128x128xf32>
    %15 = tpu.matmul %14, %10, %cst_4 {dimension_numbers = #tpu.dot_dimension_numbers<[1], [0], [0], [1], [0, 0, 1, 1], [], []>} : vector<128x4xf32>, vector<4x128xf32>, vector<128x128xf32> -> vector<128x128xf32>
    %16 = tpu.iota {dimensions = array<i32: 0>} : vector<128x1xi32>
    %c4_i32 = arith.constant 4 : i32
    %17 = vector.broadcast %c4_i32 : i32 to vector<128x1xi32>
    %18 = arith.shrsi %16, %17 : vector<128x1xi32>
    %19 = tpu.iota {dimensions = array<i32: 1>} : vector<1x128xi32>
    %c4_i32_5 = arith.constant 4 : i32
    %20 = vector.broadcast %c4_i32_5 : i32 to vector<1x128xi32>
    %21 = arith.shrsi %19, %20 : vector<1x128xi32>
    %22 = vector.broadcast %18 : vector<128x1xi32> to vector<128x128xi32>
    %23 = vector.broadcast %21 : vector<1x128xi32> to vector<128x128xi32>
    %24 = arith.cmpi eq, %22, %23 : vector<128x128xi32>
    %cst_6 = arith.constant -1.000000e+30 : f32
    %25 = vector.broadcast %cst_6 : f32 to vector<128x128xf32>
    %26 = arith.select %24, %15, %25 : vector<128x128xi1>, vector<128x128xf32>
    %cst_7 = arith.constant dense<0xFF800000> : vector<128xf32>
    %27 = vector.multi_reduction <maximumf>, %26, %cst_7 [0] : vector<128x128xf32> to vector<128xf32>
    %28 = vector.shape_cast %27 : vector<128xf32> to vector<1x128xf32>
    %29 = vector.broadcast %28 : vector<1x128xf32> to vector<128x128xf32>
    %30 = arith.subf %26, %29 : vector<128x128xf32>
    %31 = math.exp %30 : vector<128x128xf32>
    %cst_8 = arith.constant dense<0.000000e+00> : vector<128xf32>
    %32 = vector.multi_reduction <add>, %31, %cst_8 [0] : vector<128x128xf32> to vector<128xf32>
    %33 = vector.shape_cast %32 : vector<128xf32> to vector<1x128xf32>
    %cst_9 = arith.constant dense<0.000000e+00> : vector<4x128xf32>
    %34 = tpu.matmul %13, %31, %cst_9 {dimension_numbers = #tpu.dot_dimension_numbers<[1], [0], [0], [1], [0, 0, 1, 1], [], []>} : vector<4x128xf32>, vector<128x128xf32>, vector<4x128xf32> -> vector<4x128xf32>
    %35 = tpu.reciprocal %33 : vector<1x128xf32> -> vector<1x128xf32>
    %36 = vector.broadcast %35 : vector<1x128xf32> to vector<4x128xf32>
    %37 = arith.mulf %34, %36 : vector<4x128xf32>
    %c0_10 = arith.constant 0 : index
    %c0_11 = arith.constant 0 : index
    %38 = vector.load %arg3[%c0_10, %c0_11] : memref<4x128xf32, #tpu.memory_space<vmem>>, vector<4x128xf32>
    tpu.vector_store %arg3[%c0_10, %c0_11], %37 {strides = array<i32>} : memref<4x128xf32, #tpu.memory_space<vmem>>, vector<4x128xf32>,
    return
  }
  func.func @transform_0(%arg0: i32) -> (i32, i32) {
    %c0_i32 = arith.constant 0 : i32
    %c0_i32_0 = arith.constant 0 : i32
    return %c0_i32, %arg0 : i32, i32
  }
  func.func @transform_1(%arg0: i32) -> (i32, i32) {
    %c0_i32 = arith.constant 0 : i32
    %c0_i32_0 = arith.constant 0 : i32
    %c0_i32_1 = arith.constant 0 : i32
    return %c0_i32, %c0_i32_0 : i32, i32
  }
  func.func @transform_2(%arg0: i32) -> (i32, i32) {
    %c0_i32 = arith.constant 0 : i32
    %c0_i32_0 = arith.constant 0 : i32
    return %c0_i32, %arg0 : i32, i32
  }
}

</mosaic_0001>

<bundles_post_ra>
// kernel: model_forward.1
= control target key start
LH: loop header
LB: loop body
LE: loop exit
PB: predicated region body
PF: predicated region fallthrough
CT: control target
= control target key end

     0   :  { %s1050_s9 = smov 0   ;;  %s1199_s0 = inlined_call_operand.vmem [shape: f32[8,256], index: 0, kind: input, shape index: {}]   ;;  %s1200_s1 = inlined_call_operand.vmem [shape: f32[8,5], index: 1, kind: input, shape index: {}]   ;;  %s1201_s2 = inlined_call_operand.vmem [shape: f32[4,256], index: 2, kind: output, shape index: {}]  }
   0x1 LB: > { %s813_s10 = sadd.s32 4294967295, %s1029_s9   ;;  %p817_p0 = scmp.ge.s32.totalorder %s1029_s9, 1  ;;  %s1029_s9 = sphi %s1050_s9, %s12_s9  }
   0x2   : > { %p111_p1 = scmp.lt.s32.totalorder %s1029_s9, 3 }
   0x4   : > { %p112_p2 = pnand %p817_p0, %p111_p1 }
   0x5   : > { %p131_p3 = scmp.lt.s32.totalorder (!%p112_p2), %s813_s10, 1  ;;  %v1031_v0 = vmov (!%p112_p2), 0.0   ;;  %vm1032_vm0 = vmmov (!%p112_p2), 0   ;;  %v140_v1 = vld [vmem:[%s1200_s1] sm:$0xff] (!%p112_p2)  ;;  %v1033_v2 = vmov (!%p112_p2), 4   ;;  %vm149_vm1 = vcmask (!%p112_p2), 1043456  }
   0x6   : > { %115 = sbr.rel (%p112_p2) target bundleno = 921 (0x399), region = 28  ;;  %881 = vmatprep.subr.mxu0 (!%p112_p2), %v1031_v0  ;;  %883 = vmatprep.mubr.msk.f32.mxu0 (!%p112_p2), %vm1032_vm0, %v1031_v0  ;;  %vm146_vm2 = vcmask (!%p112_p2), 31744   ;;  %v223_v4 = vrot.slane (!%p112_p2), %v140_v1, 4  ;;  %v1034_v30 = vmov (!%p112_p2), 0.0|0.0   ;;  %v529_v31 = vlaneseq (!%p112_p2) }
   0x7   : > { %886 = vmatprep.subr.mxu1 (!%p112_p2), %v1031_v0  ;;  %888 = vmatprep.mubr.msk.f32.mxu1 (!%p112_p2), %vm1032_vm0, %v1031_v0 }
   0x8   : > { %988 = vset.pattern.permute.xlu0 (!%p112_p2), %v1033_v2  ;;  %v1096_v34 = vshrl.u32 (!%p112_p2), %v529_v31, 7  ;;  %v563_v36 = vand.u32 (!%p112_p2), 127, %v529_v31 }
   0x9   : > { %143 = vperm.xlu0 (!%p112_p2), %988, %v140_v1  }
   0xa   : > { %v531_v35 = vadd.s32 (!%p112_p2), 8, %v1096_v34  ;;  %v535_v37 = vadd.s32 (!%p112_p2), 40, %v1096_v34  ;;  %v534_v38 = vadd.s32 (!%p112_p2), 32, %v1096_v34  ;;  %v1101_v42 = vshra.s32 (!%p112_p2), %v563_v36, 4 }
   0xb   : > { %v546_v44 = vshra.s32 (!%p112_p2), %v1096_v34, 4  ;;  %v533_v46 = vadd.s32 (!%p112_p2), 24, %v1096_v34  ;;  %v537_v47 = vadd.s32 (!%p112_p2), 56, %v1096_v34  ;;  %v532_v48 = vadd.s32 (!%p112_p2), 16, %v1096_v34 }
   0xc   : > { %v547_v41 = vshra.s32 (!%p112_p2), %v531_v35, 4  ;;  %v551_v43 = vshra.s32 (!%p112_p2), %v535_v37, 4  ;;  %v550_v45 = vshra.s32 (!%p112_p2), %v534_v38, 4  ;;  %v536_v49 = vadd.s32 (!%p112_p2), 48, %v1096_v34 }
   0xd   : > { %s1203_s10 = smov (!%p131_p3, %s813_s10), 1  ;;  %vm565_vm5 = vcmp.eq.s32.totalorder %v546_v44, %v1101_v42  ;;  %v549_v52 = vshra.s32 %v533_v46, 4  ;;  %v553_v58 = vshra.s32 %v537_v47, 4  ;;  %v548_v59 = vshra.s32 %v532_v48, 4 }
   0xe   : > { %s818_s13 = sshll.u32 %s1203_s10, 3  ;;  %vm566_vm3 = vcmp.eq.s32.totalorder %v547_v41, %v1101_v42  ;;  %vm570_vm4 = vcmp.eq.s32.totalorder %v551_v43, %v1101_v42  ;;  %vm569_vm6 = vcmp.eq.s32.totalorder %v550_v45, %v1101_v42  ;;  %v552_v61 = vshra.s32 %v536_v49, 4  ;;  %s819_s17 = sshll.u32 %s1203_s10, 2 }
   0xf   : > { %s134_s16 = scalar_lea.vmem %s1199_s0, %s818_s13  ;;  %vm568_vm7 = vcmp.eq.s32.totalorder %v549_v52, %v1101_v42  ;;  %vm572_vm8 = vcmp.eq.s32.totalorder %v553_v58, %v1101_v42  ;;  %v539_v62 = vadd.s32 72, %v1096_v34  ;;  %vm567_vm9 = vcmp.eq.s32.totalorder %v548_v59, %v1101_v42  ;;  %s138_s20 = scalar_lea.vmem %s1201_s2, %s819_s17 }
  0x10   : > { %v139_v3 = vld [vmem:[%s134_s16] sm:$0xff]  ;;  %vm571_vm10 = vcmp.eq.s32.totalorder %v552_v61, %v1101_v42  ;;  %v538_v63 = vadd.s32 64, %v1096_v34 }
  0x11   : > { %882 = vmatpush3.msk.msra.mxu0 %vm149_vm1, %v139_v3  ;;  %v224_v5 = vrot.slane %v139_v3, 4 }
  0x12   : > { %884 = vmatmul.mubr.msk.f32.vlgmr.msra.gmra.mrb[0].mxu0 %vm146_vm2, %v140_v1 }
  0x13   : > { %887 = vmatpush3.msk.msra.mxu1 %vm149_vm1, %v224_v5 }
  0x14   : > { %889 = vmatmul.mubr.msk.f32.vlgmr.msra.gmra.mrb[0].mxu1 %vm146_vm2, %v223_v4  ;;  %952 = vmatprep.subr.bf16.mxu1 %v1034_v30 }
  0x15   : > { %949 = vmatprep.mubr.msk.f32.mxu1 %vm1032_vm0, %v1031_v0 }
  0x88   : > { %v144_v6 = vpop.permute.xlu0 %143 }
  0x89   : > { %v225_v7 = vrot.slane %v144_v6, 4 }
  0xe5   : > { %v219_v8 = vpop.f32.mrb[0].mxu0 }
  0xe6   : > { %v220_v9 = vadd.f32 %v219_v8, %v144_v6  ;;  %v885_v10 = vpop.f32.mrb[1].mxu0 }
  0xe7   : > { %v297_v11 = vpop.f32.mrb[0].mxu1  ;;  %v541_v10 = vadd.s32 88, %v1096_v34 }
  0xe8   : > { %v1074_v12 = vadd.f32 %v297_v11, %v225_v7  ;;  %v890_v13 = vpop.f32.mrb[1].mxu1  ;;  %891 = vmatprep.subr.msk.mxu0 %vm149_vm1, %v220_v9  ;;  %v555_v7 = vshra.s32 %v539_v62, 4  ;;  %v540_v11 = vadd.s32 80, %v1096_v34 }
  0xe9   : > { %892 = vmatpush3.msk.msra.mxu0 %vm149_vm1, %v220_v9  ;;  %v554_v9 = vshra.s32 %v538_v63, 4 }
  0xea   : > { %301 = vxpose.xlu0.b32.start.end [1/1] (short) %v1074_v12, 128  ;;  %vm574_vm11 = vcmp.eq.s32.totalorder %v555_v7, %v1101_v42 }
  0xeb   : > { %vm573_vm12 = vcmp.eq.s32.totalorder %v554_v9, %v1101_v42 }
 0x16a   : > { %v317_v14 = vpop.trf.xlu0 }
 0x16b   : > { %893 = vmatprep.mubr.msk.f32.mxu0 %vm146_vm2, %v317_v14 }
 0x16e   : > { %v318_v15 = vpop.trf.xlu0 }
 0x16f   : > { %894 = vmatmul.mubr.msk.f32.vlgmr.msra.gmra.mrb[2].mxu0 %vm146_vm2, %v318_v15 }
 0x172   : > { %v319_v16 = vpop.trf.xlu0 }
 0x173   : > { %896 = vmatprep.mubr.msk.f32.mxu0 %vm146_vm2, %v319_v16 }
 0x176   : > { %v320_v17 = vpop.trf.xlu0 }
 0x177   : > { %897 = vmatmul.mubr.msk.f32.gmra.mrb[4].mxu0 %vm146_vm2, %v320_v17 }
 0x17a   : > { %v321_v18 = vpop.trf.xlu0 }
 0x17b   : > { %899 = vmatprep.mubr.msk.f32.mxu0 %vm146_vm2, %v321_v18  ;;  %v557_v18 = vshra.s32 %v541_v10, 4 }
 0x17d   : > { %vm576_vm13 = vcmp.eq.s32.totalorder %v557_v18, %v1101_v42 }
 0x17e   : > { %v322_v19 = vpop.trf.xlu0 }
 0x17f   : > { %900 = vmatmul.mubr.msk.f32.gmra.mrb[6].mxu0 %vm146_vm2, %v322_v19 }
 0x182   : > { %v323_v20 = vpop.trf.xlu0 }
 0x183   : > { %902 = vmatprep.mubr.msk.f32.mxu0 %vm146_vm2, %v323_v20  ;;  %v556_v20 = vshra.s32 %v540_v11, 4 }
 0x185   : > { %vm575_vm14 = vcmp.eq.s32.totalorder %v556_v20, %v1101_v42 }
 0x186   : > { %v324_v21 = vpop.trf.xlu0 }
 0x187   : > { %903 = vmatmul.mubr.msk.f32.gmra.mrb[8].mxu0 %vm146_vm2, %v324_v21  ;;  %v543_v21 = vadd.s32 104, %v1096_v34 }
 0x18a   : > { %v325_v22 = vpop.trf.xlu0 }
 0x18b   : > { %905 = vmatprep.mubr.msk.f32.mxu0 %vm146_vm2, %v325_v22  ;;  %v542_v22 = vadd.s32 96, %v1096_v34 }
 0x18d   : > { %v558_v31 = vshra.s32 %v542_v22, 4 }
 0x18e   : > { %v326_v23 = vpop.trf.xlu0 }
 0x18f   : > { %906 = vmatmul.mubr.msk.f32.gmra.mrb[10].mxu0 %vm146_vm2, %v326_v23  ;;  %vm577_vm0 = vcmp.eq.s32.totalorder %v558_v31, %v1101_v42 }
 0x192   : > { %v327_v24 = vpop.trf.xlu0 }
 0x193   : > { %908 = vmatprep.mubr.msk.f32.mxu0 %vm146_vm2, %v327_v24 }
 0x196   : > { %v328_v25 = vpop.trf.xlu0 }
 0x197   : > { %909 = vmatmul.mubr.msk.f32.gmra.mrb[12].mxu0 %vm146_vm2, %v328_v25 }
 0x19a   : > { %v329_v26 = vpop.trf.xlu0 }
 0x19b   : > { %911 = vmatprep.mubr.msk.f32.mxu0 %vm146_vm2, %v329_v26 }
 0x19e   : > { %v330_v27 = vpop.trf.xlu0 }
 0x19f   : > { %912 = vmatmul.mubr.msk.f32.gmra.mrb[14].mxu0 %vm146_vm2, %v330_v27 }
 0x1a2   : > { %v331_v28 = vpop.trf.xlu0 }
 0x1a3   : > { %914 = vmatprep.mubr.msk.f32.mxu0 %vm146_vm2, %v331_v28  ;;  %v559_v28 = vshra.s32 %v543_v21, 4 }
 0x1a5   : > { %vm578_vm15 = vcmp.eq.s32.totalorder %v559_v28, %v1101_v42 }
 0x1a6   : > { %v332_v29 = vpop.trf.xlu0 }
 0x1a7   : > { %915 = vmatmul.mubr.msk.f32.gmra.mrb[16].mxu0 %vm146_vm2, %v332_v29 }
 0x242   : > { %v895_v32 = vpop.f32.mrb[2].mxu0 }
 0x243   : > { %v450_v33 = vpop.f32.mrb[3].mxu0  ;;  %v1112_v51 = vsel %vm566_vm3, %v895_v32, -1e+30  ;;  %v545_v32 = vadd.s32 120, %v1096_v34 }
 0x244   : > { %v1116_v55 = vsel %vm565_vm5, %v450_v33, -1e+30  ;;  %v544_v33 = vadd.s32 112, %v1096_v34 }
 0x246   : > { %v560_v43 = vshra.s32 %v544_v33, 4 }
 0x248   : > { %vm579_vm2 = vcmp.eq.s32.totalorder %v560_v43, %v1101_v42 }
 0x24a   : > { %v898_v39 = vpop.f32.mrb[4].mxu0 }
 0x24b   : > { %v460_v40 = vpop.f32.mrb[5].mxu0  ;;  %v1130_v1 = vsel %vm568_vm7, %v898_v39, -1e+30 }
 0x24c   : > { %v1134_v4 = vsel %vm567_vm9, %v460_v40, -1e+30  ;;  %v561_v40 = vshra.s32 %v545_v32, 4 }
 0x24e   : > { %vm580_vm1 = vcmp.eq.s32.totalorder %v561_v40, %v1101_v42 }
 0x252   : > { %v901_v50 = vpop.f32.mrb[6].mxu0 }
 0x253   : > { %v1114_v53 = vsel %vm570_vm4, %v901_v50, -1e+30  ;;  %v470_v54 = vpop.f32.mrb[7].mxu0 }
 0x254   : > { %v598_v56 = vmax.f32 %v1112_v51, %v1114_v53  ;;  %v1120_v57 = vsel %vm569_vm6, %v470_v54, -1e+30 }
 0x255   : > { %v597_v60 = vmax.f32 %v1116_v55, %v1120_v57 }
 0x25a   : > { %v904_v0 = vpop.f32.mrb[8].mxu0 }
 0x25b   : > { %v1132_v2 = vsel %vm572_vm8, %v904_v0, -1e+30  ;;  %v480_v3 = vpop.f32.mrb[9].mxu0 }
 0x25c   : > { %v600_v5 = vmax.f32 %v1130_v1, %v1132_v2  ;;  %v1138_v6 = vsel %vm571_vm10, %v480_v3, -1e+30 }
 0x25d   : > { %v599_v8 = vmax.f32 %v1134_v4, %v1138_v6 }
 0x262   : > { %v907_v13 = vpop.f32.mrb[10].mxu0 }
 0x263   : > { %v1146_v14 = vsel %vm574_vm11, %v907_v13, -1e+30  ;;  %v490_v15 = vpop.f32.mrb[11].mxu0 }
 0x264   : > { %v602_v16 = vmax.f32 %v598_v56, %v1146_v14  ;;  %v1149_v17 = vsel %vm573_vm12, %v490_v15, -1e+30 }
 0x265   : > { %v601_v19 = vmax.f32 %v597_v60, %v1149_v17 }
 0x26a   : > { %v910_v23 = vpop.f32.mrb[12].mxu0 }
 0x26b   : > { %v1156_v24 = vsel %vm576_vm13, %v910_v23, -1e+30  ;;  %v500_v25 = vpop.f32.mrb[13].mxu0 }
 0x26c   : > { %v604_v26 = vmax.f32 %v600_v5, %v1156_v24  ;;  %v1159_v27 = vsel %vm575_vm14, %v500_v25, -1e+30 }
 0x26d   : > { %v603_v29 = vmax.f32 %v599_v8, %v1159_v27 }
 0x272   : > { %v913_v35 = vpop.f32.mrb[14].mxu0 }
 0x273   : > { %v1166_v36 = vsel %vm578_vm15, %v913_v35, -1e+30  ;;  %v510_v37 = vpop.f32.mrb[15].mxu0 }
 0x274   : > { %v606_v38 = vmax.f32 %v602_v16, %v1166_v36  ;;  %v593_v39 = vsel %vm577_vm0, %v510_v37, -1e+30 }
 0x275   : > { %v605_v41 = vmax.f32 %v601_v19, %v593_v39 }
 0x277   : > { %v609_v44 = vmax.f32 %v605_v41, %v606_v38 }
 0x27a   : > { %v916_v45 = vpop.f32.mrb[16].mxu0 }
 0x27b   : > { %v596_v46 = vsel %vm580_vm1, %v916_v45, -1e+30  ;;  %v520_v47 = vpop.f32.mrb[17].mxu0 }
 0x27c   : > { %v608_v48 = vmax.f32 %v604_v26, %v596_v46  ;;  %v595_v34 = vsel %vm579_vm2, %v520_v47, -1e+30 }
 0x27d   : > { %v607_v49 = vmax.f32 %v603_v29, %v595_v34 }
 0x27f   : > { %v610_v50 = vmax.f32 %v607_v49, %v608_v48 }
 0x281   : > { %v611_v52 = vmax.f32 %v609_v44, %v610_v50 }
 0x283   : > { %v612_v54 = vrot.slane %v611_v52, 4 }
 0x285   : > { %v613_v56 = vmax.f32 %v611_v52, %v612_v54 }
 0x287   : > { %v614_v58 = vrot.slane %v613_v56, 2 }
 0x289   : > { %v615_v59 = vmax.f32 %v613_v56, %v614_v58 }
 0x28b   : > { %v616_v60 = vrot.slane %v615_v59, 1 }
 0x28d   : > { %v617_v61 = vmax.f32 %v615_v59, %v616_v60 }
 0x28f   : > { %v618_v62 = vsub.f32 %v1116_v55, %v617_v61  ;;  %v619_v63 = vsub.f32 %v1112_v51, %v617_v61  ;;  %v620_v42 = vsub.f32 %v1134_v4, %v617_v61  ;;  %v621_v0 = vsub.f32 %v1130_v1, %v617_v61 }
 0x290   : > { %v622_v3 = vsub.f32 %v1120_v57, %v617_v61  ;;  %v623_v5 = vsub.f32 %v1114_v53, %v617_v61  ;;  %v624_v7 = vsub.f32 %v1138_v6, %v617_v61  ;;  %v625_v8 = vsub.f32 %v1132_v2, %v617_v61 }
 0x291   : > { %v626_v9 = vsub.f32 %v1149_v17, %v617_v61  ;;  %v627_v10 = vsub.f32 %v1146_v14, %v617_v61  ;;  %v628_v55 = vsub.f32 %v1159_v27, %v617_v61  ;;  %v629_v51 = vsub.f32 %v1156_v24, %v617_v61 }
 0x292   : > { %v630_v11 = vsub.f32 %v593_v39, %v617_v61  ;;  %v631_v4 = vsub.f32 %v1166_v36, %v617_v61  ;;  %v632_v1 = vsub.f32 %v595_v34, %v617_v61  ;;  %v633_v13 = vsub.f32 %v596_v46, %v617_v61 }
 0x293   : > { %v634_v57 = vmul.f32 1.442695, %v618_v62  ;;  %v636_v15 = vmul.f32 1.442695, %v619_v63  ;;  %v638_v53 = vmul.f32 1.442695, %v620_v42 }
 0x294   : > { %v640_v16 = vmul.f32 1.442695, %v621_v0  ;;  %v642_v6 = vmul.f32 1.442695, %v622_v3  ;;  %v644_v2 = vmul.f32 1.442695, %v623_v5 }
 0x295   : > { %989 = vpow2.f32 %v634_v57  ;;  %v646_v17 = vmul.f32 1.442695, %v624_v7  ;;  %v648_v14 = vmul.f32 1.442695, %v625_v8  ;;  %v650_v18 = vmul.f32 1.442695, %v626_v9 }
 0x296   : > { %991 = vpow2.f32 %v636_v15  ;;  %v652_v19 = vmul.f32 1.442695, %v627_v10  ;;  %v654_v20 = vmul.f32 1.442695, %v628_v55  ;;  %v656_v21 = vmul.f32 1.442695, %v629_v51 }
 0x297   : > { %993 = vpow2.f32 %v638_v53  ;;  %v658_v22 = vmul.f32 1.442695, %v630_v11  ;;  %v660_v23 = vmul.f32 1.442695, %v631_v4  ;;  %v662_v25 = vmul.f32 1.442695, %v632_v1 }
 0x298   : > { %995 = vpow2.f32 %v640_v16  ;;  %v664_v27 = vmul.f32 1.442695, %v633_v13 }
 0x299   : > { %997 = vpow2.f32 %v642_v6 }
 0x29a   : > { %999 = vpow2.f32 %v644_v2 }
 0x29b   : > { %1001 = vpow2.f32 %v646_v17 }
 0x29c   : > { %1003 = vpow2.f32 %v648_v14 }
 0x29d   : > { %1005 = vpow2.f32 %v650_v18 }
 0x29e   : > { %1007 = vpow2.f32 %v652_v19 }
 0x29f   : > { %v990_v24 = vpop.eup %989  ;;  %1009 = vpow2.f32 %v654_v20 }
 0x2a0   : > { %v992_v26 = vpop.eup %991  ;;  %1011 = vpow2.f32 %v656_v21 }
 0x2a1   : > { %v994_v28 = vpop.eup %993  ;;  %1013 = vpow2.f32 %v658_v22  ;;  %v666_v29 = vadd.f32 %v992_v26, %v990_v24  ;;  %v953_v31 = vpack.c.bf16 %v992_v26, %v990_v24 }
 0x2a2   : > { %v996_v32 = vpop.eup %995  ;;  %1015 = vpow2.f32 %v660_v23 }
 0x2a3   : > { %v998_v33 = vpop.eup %997  ;;  %1017 = vpow2.f32 %v662_v25  ;;  %v667_v35 = vadd.f32 %v994_v28, %v666_v29  ;;  %954 = vmatpush3.bf16.msra.mxu1 %v953_v31  ;;  %v956_v36 = vpack.c.bf16 %v996_v32, %v994_v28 }
 0x2a4   : > { %v1000_v37 = vpop.eup %999  ;;  %1019 = vpow2.f32 %v664_v27  ;;  %955 = vmatprep.subr.bf16.mxu1 %v1034_v30 }
 0x2a5   : > { %v1002_v38 = vpop.eup %1001  ;;  %v668_v39 = vadd.f32 %v996_v32, %v667_v35  ;;  %v959_v40 = vpack.c.bf16 %v1000_v37, %v998_v33 }
 0x2a6   : > { %v1004_v41 = vpop.eup %1003 }
 0x2a7   : > { %v1006_v43 = vpop.eup %1005  ;;  %v669_v44 = vadd.f32 %v998_v33, %v668_v39  ;;  %957 = vmatpush3.bf16.msra.mxu1 %v956_v36  ;;  %v962_v45 = vpack.c.bf16 %v1004_v41, %v1002_v38 }
 0x2a8   : > { %v1008_v46 = vpop.eup %1007  ;;  %958 = vmatprep.subr.bf16.mxu1 %v1034_v30 }
 0x2a9   : > { %v1010_v47 = vpop.eup %1009  ;;  %v670_v48 = vadd.f32 %v1000_v37, %v669_v44  ;;  %v965_v34 = vpack.c.bf16 %v1008_v46, %v1006_v43 }
 0x2aa   : > { %v1012_v49 = vpop.eup %1011 }
 0x2ab   : > { %v1014_v50 = vpop.eup %1013  ;;  %v671_v52 = vadd.f32 %v1002_v38, %v670_v48  ;;  %960 = vmatpush3.bf16.msra.mxu1 %v959_v40  ;;  %v968_v54 = vpack.c.bf16 %v1012_v49, %v1010_v47 }
 0x2ac   : > { %v1016_v56 = vpop.eup %1015  ;;  %961 = vmatprep.subr.bf16.mxu1 %v1034_v30 }
 0x2ad   : > { %v1018_v58 = vpop.eup %1017  ;;  %v672_v59 = vadd.f32 %v1004_v41, %v671_v52  ;;  %v971_v60 = vpack.c.bf16 %v1016_v56, %v1014_v50 }
 0x2ae   : > { %v1020_v61 = vpop.eup %1019 }
 0x2af   : > { %v673_v62 = vadd.f32 %v1006_v43, %v672_v59  ;;  %963 = vmatpush3.bf16.msra.mxu1 %v962_v45  ;;  %v974_v63 = vpack.c.bf16 %v1020_v61, %v1018_v58 }
 0x2b0   : > { %964 = vmatprep.subr.bf16.mxu1 %v1034_v30 }
 0x2b1   : > { %v674_v42 = vadd.f32 %v1008_v46, %v673_v62 }
 0x2b3   : > { %v675_v0 = vadd.f32 %v1010_v47, %v674_v42  ;;  %966 = vmatpush3.bf16.msra.mxu1 %v965_v34 }
 0x2b4   : > { %967 = vmatprep.subr.bf16.mxu1 %v1034_v30 }
 0x2b5   : > { %v676_v3 = vadd.f32 %v1012_v49, %v675_v0 }
 0x2b7   : > { %v677_v5 = vadd.f32 %v1014_v50, %v676_v3  ;;  %969 = vmatpush3.bf16.msra.mxu1 %v968_v54 }
 0x2b8   : > { %970 = vmatprep.subr.bf16.mxu1 %v1034_v30 }
 0x2b9   : > { %v678_v7 = vadd.f32 %v1016_v56, %v677_v5 }
 0x2bb   : > { %v679_v8 = vadd.f32 %v1018_v58, %v678_v7  ;;  %972 = vmatpush3.bf16.msra.mxu1 %v971_v60 }
 0x2bc   : > { %973 = vmatprep.subr.bf16.mxu1 %v1034_v30 }
 0x2bd   : > { %v680_v9 = vadd.f32 %v1020_v61, %v679_v8 }
 0x2bf   : > { %975 = vmatpush3.bf16.msra.mxu1 %v974_v63  ;;  %v681_v10 = vrot.slane %v680_v9, 4 }
 0x2c1   : > { %v682_v55 = vadd.f32 %v681_v10, %v680_v9 }
 0x2c2   : > { %950 = vmatmul.mubr.f32.vlgmr.msra.gmra.mrb[2].mxu1 %v1074_v12 }
 0x2c3   : > { %v683_v51 = vrot.slane %v682_v55, 2 }
 0x2c5   : > { %v684_v11 = vadd.f32 %v683_v51, %v682_v55 }
 0x2c7   : > { %v685_v4 = vrot.slane %v684_v11, 1 }
 0x2c9   : > { %v686_v1 = vadd.f32 %v685_v4, %v684_v11 }
 0x2cb   : > { %1021 = vrcp.f32 %v686_v1 }
 0x2d5   : > { %v1022_v13 = vpop.eup %1021 }
 0x395   : > { %v753_v57 = vpop.f32.mrb[2].mxu1 }
 0x396   : > { %v758_v15 = vmul.f32 %v1022_v13, %v753_v57  ;;  %v951_v30 = vpop.f32.mrb[3].mxu1 }
 0x398   : > { %759 = vst [vmem:[%s138_s20] sm:$0xf] %v758_v15 }
 0x399 PF: > { %s12_s9 = sadd.s32 1, %s1029_s9  }
 0x39a   : > { %p9_p4 = scmp.ge.s32.totalorder %s12_s9, 4  }
 0x39c   :  { %11 = sbr.rel (!%p9_p4) target bundleno = 1 (0x1), region = 58 }

</bundles_post_ra>
